<compile_context>
chip_gen: v7x
topology: tpu7x:2x2x1
jax: 0.10.0
libtpu: 0.0.40
codegen_flags: <defaults>
</compile_context>

<pallas_src>
import functools

import jax
import jax.numpy as jnp
from jax.experimental import pallas as pl
from jax.experimental.pallas import tpu as pltpu


def _round_up(x, m):
    return ((x + m - 1) // m) * m


def paramnet_kernel(t_ref, w1_ref, b1_ref, w2_ref, b2_ref,
                    w3_ref, b3_ref, w4_ref, b4_ref, o_ref, *, apply_sigmoid):
    # Batch-on-lanes layout: t tile is (1, TM); activations are (H, TM);
    # weights are (out_features, in_features); biases are (out_features, 1).
    x = t_ref[...]                                                  # (1, TM)

    # Layer 1 has K=1: a broadcast (outer product) on the VPU, no MXU pass.
    h = jnp.tanh(w1_ref[...] * x + b1_ref[...])                     # (H, TM)

    h = jnp.tanh(jnp.dot(w2_ref[...], h,
                         preferred_element_type=jnp.float32) + b2_ref[...])
    h = jnp.tanh(jnp.dot(w3_ref[...], h,
                         preferred_element_type=jnp.float32) + b3_ref[...])
    out = jnp.dot(w4_ref[...], h,
                  preferred_element_type=jnp.float32) + b4_ref[...]  # (out, TM)

    if apply_sigmoid:
        out = jax.nn.sigmoid(out)   # fused epilogue for get_params (EUP slot)

    o_ref[...] = out.astype(o_ref.dtype)


def _paramnet_call(t, params, *, tile_m=1024, apply_sigmoid=False):
    """Runs the kernel in transposed layout; returns ((out_sz, n_pad), n)."""
    (w1, b1), (w2, b2), (w3, b3), (w4, b4) = params
    n = t.shape[0]
    hidden = w1.shape[0]
    out_sz = w4.shape[0]

    # Batch is the lane dim -> tile must be a multiple of 128; pad the batch.
    tile_m = max(128, min(_round_up(tile_m, 128), _round_up(n, 128)))
    n_pad = _round_up(n, tile_m)
    # Keep >= 2 parallel grid steps when possible so v7x's 2 TCs both get work.
    if n_pad // tile_m == 1 and tile_m % 256 == 0:
        tile_m //= 2

    t_row = jnp.pad(t.reshape(1, n).astype(jnp.float32),
                    ((0, 0), (0, n_pad - n)))

    full = lambda shape: pl.BlockSpec(shape, lambda i: (0, 0))

    weight_bytes = 4 * (hidden * 1 + 2 * hidden * hidden + hidden * out_sz
                        + 3 * hidden + out_sz)
    cost = pl.CostEstimate(
        flops=2 * n_pad * (hidden + 2 * hidden * hidden + hidden * out_sz),
        transcendentals=n_pad * (3 * hidden + (out_sz if apply_sigmoid else 0)),
        bytes_accessed=4 * n_pad * (1 + out_sz) + weight_bytes,
    )

    kernel = functools.partial(paramnet_kernel, apply_sigmoid=apply_sigmoid)

    out_t = pl.pallas_call(
        kernel,
        out_shape=jax.ShapeDtypeStruct((out_sz, n_pad), jnp.float32),
        grid_spec=pltpu.PrefetchScalarGridSpec(
            num_scalar_prefetch=0,
            grid=(n_pad // tile_m,),
            in_specs=[
                pl.BlockSpec((1, tile_m), lambda i: (0, i)),    # t tile (1, TM)
                full((hidden, 1)), full((hidden, 1)),           # W1 (H,1), b1
                full((hidden, hidden)), full((hidden, 1)),      # W2, b2
                full((hidden, hidden)), full((hidden, 1)),      # W3, b3
                full((out_sz, hidden)), full((out_sz, 1)),      # W4, b4
            ],
            out_specs=pl.BlockSpec((out_sz, tile_m), lambda i: (0, i)),
        ),
        compiler_params=pltpu.CompilerParams(
            dimension_semantics=("parallel",)),
        cost_estimate=cost,
    )(t_row, w1, b1, w2, b2, w3, b3, w4, b4)
    return out_t, n


def paramnet_forward(t, params, *, tile_m=1024):
    """t: (N, 1) float32 -> raw params (N, output_size), matching ParamNet.forward."""
    out_t, n = _paramnet_call(t, params, tile_m=tile_m, apply_sigmoid=False)
    return out_t[:, :n].T


def paramnet_get_params(t, params, *, tile_m=1024):
    """ParamNet.get_params: sigmoid fused in-kernel; returns (beta, gamma), each (N,)."""
    out_t, n = _paramnet_call(t, params, tile_m=tile_m, apply_sigmoid=True)
    return out_t[0, :n], out_t[1, :n]


def init_paramnet_params(key, hidden_neurons=20, output_size=2):
    """Xavier-uniform (tanh gain 5/3) weights in PyTorch (out_features, in_features)
    layout; biases = 0.01 stored as (out_features, 1)."""
    gain = 5.0 / 3.0
    dims = [(hidden_neurons, 1),
            (hidden_neurons, hidden_neurons),
            (hidden_neurons, hidden_neurons),
            (output_size, hidden_neurons)]
    params = []
    for fan_out, fan_in in dims:
        key, sub = jax.random.split(key)
        bound = gain * (6.0 / (fan_in + fan_out)) ** 0.5
        w = jax.random.uniform(sub, (fan_out, fan_in), jnp.float32,
                               minval=-bound, maxval=bound)
        b = jnp.full((fan_out, 1), 0.01, jnp.float32)
        params.append((w, b))
    return params


def paramnet_reference(t, params):
    """Pure-JAX reference of the same forward pass (PyTorch weight layout)."""
    (w1, b1), (w2, b2), (w3, b3), (w4, b4) = params
    h = jnp.tanh(t @ w1.T + b1.T)
    h = jnp.tanh(h @ w2.T + b2.T)
    h = jnp.tanh(h @ w3.T + b3.T)
    return h @ w4.T + b4.T


if __name__ == "__main__":
    key = jax.random.PRNGKey(0)
    key_p, key_t = jax.random.split(key)

    hidden_neurons = 20
    output_size = 2
    batch = 8  # N time points; t shape (N, 1) like the PyTorch module expects

    params = init_paramnet_params(key_p, hidden_neurons, output_size)
    t = jax.random.uniform(key_t, (batch, 1), jnp.float32)

    out = jax.block_until_ready(paramnet_forward(t, params))
    ref = paramnet_reference(t, params)
    assert out.shape == (batch, output_size)
    assert jnp.allclose(out, ref, atol=1e-5, rtol=1e-5), "forward mismatch vs reference"

    # get_params equivalent with the sigmoid fused into the kernel epilogue.
    beta, gamma = paramnet_get_params(t, params)
    jax.block_until_ready((beta, gamma))
    ref_sig = jax.nn.sigmoid(ref)
    assert jnp.allclose(beta, ref_sig[:, 0], atol=1e-5, rtol=1e-5), "beta mismatch"
    assert jnp.allclose(gamma, ref_sig[:, 1], atol=1e-5, rtol=1e-5), "gamma mismatch"

    print("KERNEL_OK")
</pallas_src>

<mosaic_0001>
module attributes {stable_mosaic.version = 11 : i64} {
  func.func @paramnet_kernel(%arg0: i32, %arg1: memref<1x128xf32, #tpu.memory_space<vmem>>, %arg2: memref<20x1xf32, #tpu.memory_space<vmem>>, %arg3: memref<20x1xf32, #tpu.memory_space<vmem>>, %arg4: memref<20x20xf32, #tpu.memory_space<vmem>>, %arg5: memref<20x1xf32, #tpu.memory_space<vmem>>, %arg6: memref<20x20xf32, #tpu.memory_space<vmem>>, %arg7: memref<20x1xf32, #tpu.memory_space<vmem>>, %arg8: memref<2x20xf32, #tpu.memory_space<vmem>>, %arg9: memref<2x1xf32, #tpu.memory_space<vmem>>, %arg10: memref<2x128xf32, #tpu.memory_space<vmem>>) attributes {dimension_semantics = [#tpu.dimension_semantics<parallel>], iteration_bounds = array<i64: 1>, scalar_prefetch = 0 : i64, scratch_operands = 0 : i64, tpu.core_type = #tpu.core_type<tc>, window_params = [{transform_indices = @transform_0, window_bounds = array<i64: 1, 128>}, {pipeline_mode = #tpu.pipeline_mode<synchronous>, transform_indices = @transform_1, window_bounds = array<i64: 20, 1>}, {pipeline_mode = #tpu.pipeline_mode<synchronous>, transform_indices = @transform_2, window_bounds = array<i64: 20, 1>}, {pipeline_mode = #tpu.pipeline_mode<synchronous>, transform_indices = @transform_3, window_bounds = array<i64: 20, 20>}, {pipeline_mode = #tpu.pipeline_mode<synchronous>, transform_indices = @transform_4, window_bounds = array<i64: 20, 1>}, {pipeline_mode = #tpu.pipeline_mode<synchronous>, transform_indices = @transform_5, window_bounds = array<i64: 20, 20>}, {pipeline_mode = #tpu.pipeline_mode<synchronous>, transform_indices = @transform_6, window_bounds = array<i64: 20, 1>}, {pipeline_mode = #tpu.pipeline_mode<synchronous>, transform_indices = @transform_7, window_bounds = array<i64: 2, 20>}, {pipeline_mode = #tpu.pipeline_mode<synchronous>, transform_indices = @transform_8, window_bounds = array<i64: 2, 1>}, {transform_indices = @transform_9, window_bounds = array<i64: 2, 128>}]} {
    %c0 = arith.constant 0 : index
    %c0_0 = arith.constant 0 : index
    %0 = vector.load %arg1[%c0, %c0_0] : memref<1x128xf32, #tpu.memory_space<vmem>>, vector<1x128xf32>
    %c0_1 = arith.constant 0 : index
    %c0_2 = arith.constant 0 : index
    %1 = vector.load %arg2[%c0_1, %c0_2] : memref<20x1xf32, #tpu.memory_space<vmem>>, vector<20x1xf32>
    %2 = vector.broadcast %1 : vector<20x1xf32> to vector<20x128xf32>
    %3 = vector.broadcast %0 : vector<1x128xf32> to vector<20x128xf32>
    %4 = arith.mulf %2, %3 : vector<20x128xf32>
    %c0_3 = arith.constant 0 : index
    %c0_4 = arith.constant 0 : index
    %5 = vector.load %arg3[%c0_3, %c0_4] : memref<20x1xf32, #tpu.memory_space<vmem>>, vector<20x1xf32>
    %6 = vector.broadcast %5 : vector<20x1xf32> to vector<20x128xf32>
    %7 = arith.addf %4, %6 : vector<20x128xf32>
    %8 = math.tanh %7 : vector<20x128xf32>
    %c0_5 = arith.constant 0 : index
    %c0_6 = arith.constant 0 : index
    %9 = vector.load %arg4[%c0_5, %c0_6] : memref<20x20xf32, #tpu.memory_space<vmem>>, vector<20x20xf32>
    %cst = arith.constant dense<0.000000e+00> : vector<20x128xf32>
    %10 = tpu.matmul %9, %8, %cst {dimension_numbers = #tpu.dot_dimension_numbers<[1], [0], [0], [1], [0, 0, 1, 1], [], []>} : vector<20x20xf32>, vector<20x128xf32>, vector<20x128xf32> -> vector<20x128xf32>
    %c0_7 = arith.constant 0 : index
    %c0_8 = arith.constant 0 : index
    %11 = vector.load %arg5[%c0_7, %c0_8] : memref<20x1xf32, #tpu.memory_space<vmem>>, vector<20x1xf32>
    %12 = vector.broadcast %11 : vector<20x1xf32> to vector<20x128xf32>
    %13 = arith.addf %10, %12 : vector<20x128xf32>
    %14 = math.tanh %13 : vector<20x128xf32>
    %c0_9 = arith.constant 0 : index
    %c0_10 = arith.constant 0 : index
    %15 = vector.load %arg6[%c0_9, %c0_10] : memref<20x20xf32, #tpu.memory_space<vmem>>, vector<20x20xf32>
    %cst_11 = arith.constant dense<0.000000e+00> : vector<20x128xf32>
    %16 = tpu.matmul %15, %14, %cst_11 {dimension_numbers = #tpu.dot_dimension_numbers<[1], [0], [0], [1], [0, 0, 1, 1], [], []>} : vector<20x20xf32>, vector<20x128xf32>, vector<20x128xf32> -> vector<20x128xf32>
    %c0_12 = arith.constant 0 : index
    %c0_13 = arith.constant 0 : index
    %17 = vector.load %arg7[%c0_12, %c0_13] : memref<20x1xf32, #tpu.memory_space<vmem>>, vector<20x1xf32>
    %18 = vector.broadcast %17 : vector<20x1xf32> to vector<20x128xf32>
    %19 = arith.addf %16, %18 : vector<20x128xf32>
    %20 = math.tanh %19 : vector<20x128xf32>
    %c0_14 = arith.constant 0 : index
    %c0_15 = arith.constant 0 : index
    %21 = vector.load %arg8[%c0_14, %c0_15] : memref<2x20xf32, #tpu.memory_space<vmem>>, vector<2x20xf32>
    %cst_16 = arith.constant dense<0.000000e+00> : vector<2x128xf32>
    %22 = tpu.matmul %21, %20, %cst_16 {dimension_numbers = #tpu.dot_dimension_numbers<[1], [0], [0], [1], [0, 0, 1, 1], [], []>} : vector<2x20xf32>, vector<20x128xf32>, vector<2x128xf32> -> vector<2x128xf32>
    %c0_17 = arith.constant 0 : index
    %c0_18 = arith.constant 0 : index
    %23 = vector.load %arg9[%c0_17, %c0_18] : memref<2x1xf32, #tpu.memory_space<vmem>>, vector<2x1xf32>
    %24 = vector.broadcast %23 : vector<2x1xf32> to vector<2x128xf32>
    %25 = arith.addf %22, %24 : vector<2x128xf32>
    %c0_19 = arith.constant 0 : index
    %c0_20 = arith.constant 0 : index
    %26 = vector.load %arg10[%c0_19, %c0_20] : memref<2x128xf32, #tpu.memory_space<vmem>>, vector<2x128xf32>
    tpu.vector_store %arg10[%c0_19, %c0_20], %25 {strides = array<i32>} : memref<2x128xf32, #tpu.memory_space<vmem>>, vector<2x128xf32>,
    return
  }
  func.func @transform_0(%arg0: i32) -> (i32, i32) {
    %c0_i32 = arith.constant 0 : i32
    %c0_i32_0 = arith.constant 0 : i32
    return %c0_i32, %arg0 : i32, i32
  }
  func.func @transform_1(%arg0: i32) -> (i32, i32) {
    %c0_i32 = arith.constant 0 : i32
    %c0_i32_0 = arith.constant 0 : i32
    %c0_i32_1 = arith.constant 0 : i32
    return %c0_i32, %c0_i32_0 : i32, i32
  }
  func.func @transform_2(%arg0: i32) -> (i32, i32) {
    %c0_i32 = arith.constant 0 : i32
    %c0_i32_0 = arith.constant 0 : i32
    %c0_i32_1 = arith.constant 0 : i32
    return %c0_i32, %c0_i32_0 : i32, i32
  }
  func.func @transform_3(%arg0: i32) -> (i32, i32) {
    %c0_i32 = arith.constant 0 : i32
    %c0_i32_0 = arith.constant 0 : i32
    %c0_i32_1 = arith.constant 0 : i32
    return %c0_i32, %c0_i32_0 : i32, i32
  }
  func.func @transform_4(%arg0: i32) -> (i32, i32) {
    %c0_i32 = arith.constant 0 : i32
    %c0_i32_0 = arith.constant 0 : i32
    %c0_i32_1 = arith.constant 0 : i32
    return %c0_i32, %c0_i32_0 : i32, i32
  }
  func.func @transform_5(%arg0: i32) -> (i32, i32) {
    %c0_i32 = arith.constant 0 : i32
    %c0_i32_0 = arith.constant 0 : i32
    %c0_i32_1 = arith.constant 0 : i32
    return %c0_i32, %c0_i32_0 : i32, i32
  }
  func.func @transform_6(%arg0: i32) -> (i32, i32) {
    %c0_i32 = arith.constant 0 : i32
    %c0_i32_0 = arith.constant 0 : i32
    %c0_i32_1 = arith.constant 0 : i32
    return %c0_i32, %c0_i32_0 : i32, i32
  }
  func.func @transform_7(%arg0: i32) -> (i32, i32) {
    %c0_i32 = arith.constant 0 : i32
    %c0_i32_0 = arith.constant 0 : i32
    %c0_i32_1 = arith.constant 0 : i32
    return %c0_i32, %c0_i32_0 : i32, i32
  }
  func.func @transform_8(%arg0: i32) -> (i32, i32) {
    %c0_i32 = arith.constant 0 : i32
    %c0_i32_0 = arith.constant 0 : i32
    %c0_i32_1 = arith.constant 0 : i32
    return %c0_i32, %c0_i32_0 : i32, i32
  }
  func.func @transform_9(%arg0: i32) -> (i32, i32) {
    %c0_i32 = arith.constant 0 : i32
    %c0_i32_0 = arith.constant 0 : i32
    return %c0_i32, %arg0 : i32, i32
  }
}

</mosaic_0001>

<bundles_post_ra>
// kernel: tpu_custom_call.1
= control target key start
LH: loop header
LB: loop body
LE: loop exit
PB: predicated region body
PF: predicated region fallthrough
CT: control target
= control target key end

     0   :  { %v541_v2 = vmov 0   ;;  %s698_s0 = inlined_call_operand.vmem [shape: f32[1,128], index: 0, kind: input, shape index: {}]   ;;  %s699_s1 = inlined_call_operand.vmem [shape: f32[20,1], index: 1, kind: input, shape index: {}]   ;;  %s700_s2 = inlined_call_operand.vmem [shape: f32[20,1], index: 2, kind: input, shape index: {}]   ;;  %s701_s3 = inlined_call_operand.vmem [shape: f32[20,20], index: 3, kind: input, shape index: {}]   ;;  %s702_s4 = inlined_call_operand.vmem [shape: f32[20,1], index: 4, kind: input, shape index: {}]   ;;  %s703_s5 = inlined_call_operand.vmem [shape: f32[20,20], index: 5, kind: input, shape index: {}]   ;;  %s704_s6 = inlined_call_operand.vmem [shape: f32[20,1], index: 6, kind: input, shape index: {}]   ;;  %s705_s7 = inlined_call_operand.vmem [shape: f32[2,20], index: 7, kind: input, shape index: {}]   ;;  %s706_s8 = inlined_call_operand.vmem [shape: f32[2,1], index: 8, kind: input, shape index: {}]   ;;  %s707_s9 = inlined_call_operand.hbm [shape: f32[2,128], index: 9, kind: output, shape index: {}]  }
   0x1   :  { %v61_v0 = vld [vmem:[%s700_s2] sm:$0xff]  ;;  %498 = vset.pattern.permute.xlu1 %v541_v2  ;;  %497 = vset.pattern.permute.xlu0 %v541_v2  ;;  %v62_v3 = vld [vmem:[%s700_s2 + $0x8] sm:$0xff] }
   0x2   :  { %v34_v1 = vld [vmem:[%s699_s1] sm:$0xff]  ;;  %66 = vperm.xlu1 %498, %v61_v0   ;;  %v35_v4 = vld [vmem:[%s699_s1 + $0x8] sm:$0xff] }
   0x3   :  { %39 = vperm.xlu0 %497, %v34_v1  }
   0x4   :  { %14 = vsyncpa [#allocation3], 0  ;;  %v63_v5 = vld [vmem:[%s700_s2 + $0x10] sm:$0xf]  ;;  %v89_v7 = vld [vmem:[%s702_s4 + $0x8] sm:$0xff]  ;;  %v542_v14 = vmov 0.0|0.0  }
   0x5   :  { %v36_v6 = vld [vmem:[%s699_s1 + $0x10] sm:$0xf]  ;;  %v88_v8 = vld [vmem:[%s702_s4] sm:$0xff]  ;;  %v207_v12 = vld [vmem:[%s704_s6 + $0x8] sm:$0xff]  ;;  %483 = vmatprep.subr.bf16.mxu0 %v542_v14  ;;  %486 = vmatprep.subr.bf16.mxu1 %v542_v14  ;;  %vm543_vm0 = vmmov 0   ;;  %v544_v15 = vmov 0.0  }
   0x6   :  { %71 = vperm.xlu1 %498, %v62_v3   ;;  %v206_v9 = vld [vmem:[%s704_s6] sm:$0xff]  ;;  %v90_v10 = vld [vmem:[%s702_s4 + $0x10] sm:$0xf]  ;;  %450 = vmatprep.mubr.msk.f32.mxu0 %vm543_vm0, %v544_v15  ;;  %vm116_vm1 = vcmask 1043456   ;;  %vm106_vm2 = vcmask 162816   ;;  %v86_v34 = vld [vmem:[%s701_s3 + $0x8] sm:$0xff] }
   0x7   :  { %44 = vperm.xlu0 %497, %v35_v4   ;;  %v208_v11 = vld [vmem:[%s704_s6 + $0x10] sm:$0xf]  ;;  %v320_v13 = vld [vmem:[%s706_s8] sm:$0x3]  ;;  %465 = vmatprep.mubr.msk.f32.mxu1 %vm543_vm0, %v544_v15  ;;  %v204_v53 = vld [vmem:[%s703_s5 + $0x8] sm:$0xff]  ;;  %s545_s22 = smov [#allocation2]  }
   0x8   :  { %v417_v16 = vld [vmem:[%s698_s0] ss:$0 sm:$0xff]  ;;  %v87_v35 = vld [vmem:[%s701_s3 + $0x10] sm:$0xf]  ;;  %s409_s23 = sshll.u32 %s545_s22, 4  ;;  %s410_s23 = int_to_ptr.vmem [resolvable:$true] %s409_s23 }
   0x9   :  { %v85_v32 = vld [vmem:[%s701_s3] sm:$0xff]  ;;  %v205_v54 = vld [vmem:[%s703_s5 + $0x10] sm:$0xf]  ;;  %s517_s24 = scalar_lea.vmem %s410_s23, 32  ;;  %p522_p1 = scmp.lt.s32.totalorder %s410_s23, %s410_s23 }
   0xa   :  { %76 = vperm.xlu1 %498, %v63_v5   ;;  %v203_v51 = vld [vmem:[%s703_s5] sm:$0xff]  ;;  %p518_p0 = scmp.ne.s32.totalorder %s410_s23, %s517_s24  ;;  %p523_p2 = scmp.lt.s32.totalorder %s517_s24, %s517_s24 }
   0xb   :  { %49 = vperm.xlu0 %497, %v36_v6   ;;  %v319_v6 = vld [vmem:[%s705_s7] sm:$0x3] }
   0xc   :  { %p524_p3 = por %p523_p2, %p522_p1 }
   0xe   :  { %98 = vperm.xlu1 %498, %v89_v7   ;;  %p525_p4 = pnand %p524_p3, %p518_p0 }
   0xf   :  { %93 = vperm.xlu0 %497, %v88_v8  }
  0x12   :  { %211 = vperm.xlu1 %498, %v206_v9  }
  0x13   :  { %103 = vperm.xlu0 %497, %v90_v10  }
  0x16   :  { %221 = vperm.xlu1 %498, %v208_v11  }
  0x17   :  { %216 = vperm.xlu0 %497, %v207_v12  }
  0x1b   :  { %323 = vperm.xlu0 %497, %v320_v13  }
  0x81   :  { %v67_v17 = vpop.permute.xlu1 %66 }
  0x82   :  { %v40_v18 = vpop.permute.xlu0 %39 }
  0x83   :  { %v58_v19 = vmul.f32 %v417_v16, %v40_v18 }
  0x85   :  { %v79_v20 = vadd.f32 %v67_v17, %v58_v19  ;;  %v72_v21 = vpop.permute.xlu1 %71 }
  0x86   :  { %v45_v22 = vpop.permute.xlu0 %44 }
  0x87   :  { %v59_v23 = vmul.f32 %v417_v16, %v45_v22  ;;  %499 = vtanh.f32 %v79_v20 }
  0x89   :  { %v80_v24 = vadd.f32 %v72_v21, %v59_v23  ;;  %v77_v27 = vpop.permute.xlu1 %76 }
  0x8a   :  { %v50_v25 = vpop.permute.xlu0 %49 }
  0x8b   :  { %501 = vtanh.f32 %v80_v24  ;;  %v60_v26 = vmul.f32 %v417_v16, %v50_v25 }
  0x8d   :  { %v81_v28 = vadd.f32 %v77_v27, %v60_v26  ;;  %v99_v40 = vpop.permute.xlu1 %98 }
  0x8e   :  { %v94_v37 = vpop.permute.xlu0 %93 }
  0x8f   :  { %503 = vtanh.f32 %v81_v28 }
  0x91   :  { %v500_v29 = vpop.eup %499  ;;  %v212_v56 = vpop.permute.xlu1 %211 }
  0x92   :  { %v104_v44 = vpop.permute.xlu0 %103 }
  0x95   :  { %v502_v30 = vpop.eup %501  ;;  %v222_v63 = vpop.permute.xlu1 %221 }
  0x96   :  { %v484_v31 = vpack.c.bf16 %v502_v30, %v500_v29  ;;  %v217_v59 = vpop.permute.xlu0 %216 }
  0x98   :  { %485 = vmatpush3.bf16.msra.mxu0 %v484_v31 }
  0x99   :  { %448 = vmatprep.subr.mxu0 %v544_v15  ;;  %v504_v33 = vpop.eup %503 }
  0x9a   :  { %v324_v8 = vpop.permute.xlu0 %323 }
  0x9c   :  { %449 = vmatpush3.msk.msra.mxu0 %vm116_vm1, %v504_v33 }
  0x9d   :  { %451 = vmatmul.mubr.msk.f32.vlgmr.msra.gmra.mrb[0].mxu0 %vm106_vm2, %v85_v32  ;;  %489 = vmatprep.subr.bf16.mxu0 %v542_v14 }
  0x9e   :  { %453 = vmatprep.mubr.msk.f32.mxu0 %vm543_vm0, %v544_v15 }
  0xa1   :  { %454 = vmatmul.mubr.msk.f32.gmra.mrb[2].mxu0 %vm106_vm2, %v86_v34 }
  0xa2   :  { %456 = vmatprep.mubr.msk.f32.mxu0 %vm543_vm0, %v544_v15 }
  0xa5   :  { %457 = vmatmul.mubr.msk.f32.gmra.mrb[4].mxu0 %vm106_vm2, %v87_v35 }
  0xa6   :  { %480 = vmatprep.mubr.msk.f32.mxu0 %vm543_vm0, %v544_v15 }
 0x170   :  { %v186_v36 = vpop.f32.mrb[0].mxu0 }
 0x171   :  { %v452_v38 = vpop.f32.mrb[1].mxu0  ;;  %v187_v39 = vadd.f32 %v186_v36, %v94_v37 }
 0x173   :  { %505 = vtanh.f32 %v187_v39 }
 0x174   :  { %v191_v41 = vpop.f32.mrb[2].mxu0 }
 0x175   :  { %v192_v42 = vadd.f32 %v191_v41, %v99_v40  ;;  %v455_v43 = vpop.f32.mrb[3].mxu0 }
 0x177   :  { %507 = vtanh.f32 %v192_v42 }
 0x178   :  { %v196_v45 = vpop.f32.mrb[4].mxu0 }
 0x179   :  { %v197_v46 = vadd.f32 %v196_v45, %v104_v44  ;;  %v458_v47 = vpop.f32.mrb[5].mxu0 }
 0x17b   :  { %509 = vtanh.f32 %v197_v46 }
 0x17d   :  { %v506_v48 = vpop.eup %505 }
 0x181   :  { %v508_v49 = vpop.eup %507 }
 0x182   :  { %v487_v50 = vpack.c.bf16 %v508_v49, %v506_v48 }
 0x184   :  { %488 = vmatpush3.bf16.msra.mxu1 %v487_v50 }
 0x185   :  { %463 = vmatprep.subr.mxu1 %v544_v15  ;;  %v510_v52 = vpop.eup %509 }
 0x188   :  { %464 = vmatpush3.msk.msra.mxu1 %vm116_vm1, %v510_v52 }
 0x189   :  { %466 = vmatmul.mubr.msk.f32.vlgmr.msra.gmra.mrb[0].mxu1 %vm106_vm2, %v203_v51 }
 0x18a   :  { %468 = vmatprep.mubr.msk.f32.mxu1 %vm543_vm0, %v544_v15 }
 0x18d   :  { %469 = vmatmul.mubr.msk.f32.gmra.mrb[2].mxu1 %vm106_vm2, %v204_v53 }
 0x18e   :  { %471 = vmatprep.mubr.msk.f32.mxu1 %vm543_vm0, %v544_v15 }
 0x191   :  { %472 = vmatmul.mubr.msk.f32.gmra.mrb[4].mxu1 %vm106_vm2, %v205_v54 }
 0x25c   :  { %v302_v55 = vpop.f32.mrb[0].mxu1 }
 0x25d   :  { %v467_v57 = vpop.f32.mrb[1].mxu1  ;;  %v303_v58 = vadd.f32 %v302_v55, %v212_v56 }
 0x25f   :  { %511 = vtanh.f32 %v303_v58 }
 0x260   :  { %v307_v60 = vpop.f32.mrb[2].mxu1 }
 0x261   :  { %v308_v61 = vadd.f32 %v307_v60, %v217_v59  ;;  %v470_v62 = vpop.f32.mrb[3].mxu1 }
 0x263   :  { %513 = vtanh.f32 %v308_v61 }
 0x264   :  { %v312_v0 = vpop.f32.mrb[4].mxu1 }
 0x265   :  { %v313_v1 = vadd.f32 %v312_v0, %v222_v63  ;;  %v473_v2 = vpop.f32.mrb[5].mxu1 }
 0x267   :  { %515 = vtanh.f32 %v313_v1 }
 0x269   :  { %v512_v3 = vpop.eup %511 }
 0x26d   :  { %v514_v4 = vpop.eup %513 }
 0x26e   :  { %v490_v5 = vpack.c.bf16 %v514_v4, %v512_v3 }
 0x270   :  { %491 = vmatpush3.bf16.msra.mxu0 %v490_v5 }
 0x271   :  { %478 = vmatprep.subr.mxu0 %v544_v15  ;;  %v516_v7 = vpop.eup %515 }
 0x274   :  { %479 = vmatpush3.msk.msra.mxu0 %vm116_vm1, %v516_v7 }
 0x275   :  { %481 = vmatmul.mubr.msk.f32.vlgmr.msra.gmra.mrb[6].mxu0 %vm106_vm2, %v319_v6 }
 0x348   :  { %v398_v9 = vpop.f32.mrb[6].mxu0 }
 0x349   :  { %v399_v10 = vadd.f32 %v398_v9, %v324_v8  ;;  %v482_v11 = vpop.f32.mrb[7].mxu0 }
 0x34b   :  { %402 = vst [vmem:[#allocation2] sm:$0x3] %v399_v10 }
 0x34c   :  { %528 = shalt.err (!%p525_p4)
}
 0x34d   :  { %s529_s26 = scalar_lea.hbm %s707_s9, 32 }
 0x34e   :  { %p530_p5 = scmp.ne.s32.totalorder %s707_s9, %s529_s26  ;;  %p533_p6 = scmp.lt.u32.totalorder %s529_s26, %s707_s9 }
 0x350   :  { %p535_p7 = pnand %p533_p6, %p530_p5 }
 0x352   :  { %538 = shalt.err (!%p535_p7)
}
 0x353   :  { %412 = dma.vmem_to_hbm [thread:$0]  %s410_s23, 32, %s707_s9, [#allocation3]  }
 0x354   :  { %539 = dma.done.wait [#allocation3], 32  }
 0x355   :  { %540 = vsyncadd [#allocation3], 4294967264 }
 0x356   :  { %416 = vsyncpa [#allocation3], 1 }

</bundles_post_ra>
